<compile_context>
chip_gen: v6e
topology: v6e:2x2x1
jax: 0.10.0
libtpu: 0.0.40
codegen_flags: <defaults>
</compile_context>

<pallas_src>
import functools

import jax
import jax.numpy as jnp
from jax.experimental import pallas as pl
from jax.experimental.pallas import tpu as pltpu


def _round_up(x, m):
    return ((x + m - 1) // m) * m


def _network_kernel(num_layers, *refs):
    """refs = (x_ref, W_1..W_L, W_out, o_ref). One row-tile of the forward pass."""
    x_ref = refs[0]
    layer_refs = refs[1:1 + num_layers]
    wout_ref = refs[1 + num_layers]
    o_ref = refs[2 + num_layers]

    h = x_ref[...]
    for w_ref in layer_refs:
        w = w_ref[...]
        # activation_fn applied before every layer matmul (matches reference).
        # tanh in f32 (EUP), operands fed to MXU in the weights' native dtype.
        a = jnp.tanh(h.astype(jnp.float32)).astype(w.dtype)
        h = jnp.dot(a, w, preferred_element_type=jnp.float32)
    # exposed-columns concat collapses to the last layer's output -> final mm.
    out = jnp.dot(h.astype(wout_ref.dtype), wout_ref[...],
                  preferred_element_type=jnp.float32)
    o_ref[...] = out.astype(o_ref.dtype)


def network_forward(x, layer_weights, out_weights, input_dim, *, max_tile_rows=4096):
    """Pallas forward pass.

    x: any shape with total elements divisible by input_dim (reshaped to (-1, input_dim)).
    layer_weights: list of (d_in, d_out) matrices.
    out_weights: (last_dim, output_dim) matrix.
    """
    x2d = x.reshape(-1, input_dim)
    n = x2d.shape[0]
    output_dim = out_weights.shape[1]
    num_layers = len(layer_weights)

    # Row tile: big to amortize per-step overhead, multiple of 8 (sublane), capped by N.
    # VMEM budget at TM=4096: double-buffered x(TM,32) + out(TM,16) f32 plus the
    # (TM,64)/(TM,48) intermediates is only a few MiB -- fits every generation
    # (including v7x's 64 MiB physical / 32 MiB default scoped VMEM).
    tm = min(max_tile_rows, _round_up(max(n, 1), 8))
    n_pad = _round_up(max(n, 1), tm)
    if n_pad != n:
        x2d = jnp.pad(x2d, ((0, n_pad - n), (0, 0)))
    num_blocks = n_pad // tm

    kernel = functools.partial(_network_kernel, num_layers)

    # x and output are tiled over rows; weights are full-array resident blocks.
    in_specs = [pl.BlockSpec((tm, input_dim), lambda i: (i, 0))]
    in_specs += [pl.BlockSpec(w.shape, lambda i: (0, 0)) for w in layer_weights]
    in_specs += [pl.BlockSpec(out_weights.shape, lambda i: (0, 0))]
    out_spec = pl.BlockSpec((tm, output_dim), lambda i: (i, 0))

    fn = pl.pallas_call(
        kernel,
        out_shape=jax.ShapeDtypeStruct((n_pad, output_dim), x2d.dtype),
        grid=(num_blocks,),
        in_specs=in_specs,
        out_specs=out_spec,
        compiler_params=pltpu.CompilerParams(
            dimension_semantics=("parallel",)),
    )
    out = fn(x2d, *layer_weights, out_weights)
    return out[:n]


def reference_forward(x, layer_weights, out_weights, input_dim):
    """Pure-JAX reference mirroring the PyTorch module exactly."""
    h = x.reshape(-1, input_dim)
    outs = []
    for w in layer_weights:
        h = jnp.tanh(h) @ w
        outs.append(h)
    last_dim = layer_weights[-1].shape[1]
    exposed = [0] * (len(layer_weights) - 1) + [last_dim]
    output = outs[-1][:, :exposed[-1]]
    for i in range(len(outs) - 2, -1, -1):
        output = jnp.concatenate((outs[i][:, :exposed[i]], output), axis=1)
    return output @ out_weights


if __name__ == "__main__":
    key = jax.random.PRNGKey(0)

    # Small shapes consistent with the module:
    #   input_dim=32, layer_dims=[(32, 64), (64, 48)], output_dim=16
    #   x: (2, 8, 32) -> reshaped to (16, 32)
    input_dim = 32
    layer_dims = [(32, 64), (64, 48)]
    output_dim = 16

    k_x, *k_ws = jax.random.split(key, 2 + len(layer_dims))

    x = jax.random.normal(k_x, (2, 8, input_dim), dtype=jnp.float32)

    # Deterministic "torch.randn(in, out) / sqrt(in)"-style init.
    layer_weights = []
    for kw, (din, dout) in zip(k_ws[:-1], layer_dims):
        layer_weights.append(
            jax.random.normal(kw, (din, dout), dtype=jnp.float32) / jnp.sqrt(din))
    last_dim = layer_dims[-1][1]
    out_weights = (jax.random.normal(k_ws[-1], (last_dim, output_dim),
                                     dtype=jnp.float32) / jnp.sqrt(last_dim))

    out = network_forward(x, layer_weights, out_weights, input_dim)
    out = jax.block_until_ready(out)

    ref = reference_forward(x, layer_weights, out_weights, input_dim)
    assert out.shape == (16, output_dim), out.shape
    assert jnp.allclose(out, ref, atol=1e-4, rtol=1e-4), "mismatch vs reference"

    print("KERNEL_OK")
</pallas_src>

<mosaic_0001>
module attributes {stable_mosaic.version = 11 : i64} {
  func.func @_network_kernel(%arg0: i32, %arg1: memref<16x32xf32, #tpu.memory_space<vmem>>, %arg2: memref<32x64xf32, #tpu.memory_space<vmem>>, %arg3: memref<64x48xf32, #tpu.memory_space<vmem>>, %arg4: memref<48x16xf32, #tpu.memory_space<vmem>>, %arg5: memref<16x16xf32, #tpu.memory_space<vmem>>) attributes {dimension_semantics = [#tpu.dimension_semantics<parallel>], iteration_bounds = array<i64: 1>, scalar_prefetch = 0 : i64, scratch_operands = 0 : i64, tpu.core_type = #tpu.core_type<tc>, window_params = [{transform_indices = @transform_0, window_bounds = array<i64: 16, 32>}, {pipeline_mode = #tpu.pipeline_mode<synchronous>, transform_indices = @transform_1, window_bounds = array<i64: 32, 64>}, {pipeline_mode = #tpu.pipeline_mode<synchronous>, transform_indices = @transform_2, window_bounds = array<i64: 64, 48>}, {pipeline_mode = #tpu.pipeline_mode<synchronous>, transform_indices = @transform_3, window_bounds = array<i64: 48, 16>}, {transform_indices = @transform_4, window_bounds = array<i64: 16, 16>}]} {
    %c0 = arith.constant 0 : index
    %c0_0 = arith.constant 0 : index
    %0 = vector.load %arg1[%c0, %c0_0] : memref<16x32xf32, #tpu.memory_space<vmem>>, vector<16x32xf32>
    %c0_1 = arith.constant 0 : index
    %c0_2 = arith.constant 0 : index
    %1 = vector.load %arg2[%c0_1, %c0_2] : memref<32x64xf32, #tpu.memory_space<vmem>>, vector<32x64xf32>
    %2 = math.tanh %0 : vector<16x32xf32>
    %cst = arith.constant dense<0.000000e+00> : vector<16x64xf32>
    %3 = tpu.matmul %2, %1, %cst {dimension_numbers = #tpu.dot_dimension_numbers<[1], [0], [0], [1], [0, 0, 1, 1], [], []>} : vector<16x32xf32>, vector<32x64xf32>, vector<16x64xf32> -> vector<16x64xf32>
    %c0_3 = arith.constant 0 : index
    %c0_4 = arith.constant 0 : index
    %4 = vector.load %arg3[%c0_3, %c0_4] : memref<64x48xf32, #tpu.memory_space<vmem>>, vector<64x48xf32>
    %5 = math.tanh %3 : vector<16x64xf32>
    %cst_5 = arith.constant dense<0.000000e+00> : vector<16x48xf32>
    %6 = tpu.matmul %5, %4, %cst_5 {dimension_numbers = #tpu.dot_dimension_numbers<[1], [0], [0], [1], [0, 0, 1, 1], [], []>} : vector<16x64xf32>, vector<64x48xf32>, vector<16x48xf32> -> vector<16x48xf32>
    %c0_6 = arith.constant 0 : index
    %c0_7 = arith.constant 0 : index
    %7 = vector.load %arg4[%c0_6, %c0_7] : memref<48x16xf32, #tpu.memory_space<vmem>>, vector<48x16xf32>
    %cst_8 = arith.constant dense<0.000000e+00> : vector<16x16xf32>
    %8 = tpu.matmul %6, %7, %cst_8 {dimension_numbers = #tpu.dot_dimension_numbers<[1], [0], [0], [1], [0, 0, 1, 1], [], []>} : vector<16x48xf32>, vector<48x16xf32>, vector<16x16xf32> -> vector<16x16xf32>
    %c0_9 = arith.constant 0 : index
    %c0_10 = arith.constant 0 : index
    %9 = vector.load %arg5[%c0_9, %c0_10] : memref<16x16xf32, #tpu.memory_space<vmem>>, vector<16x16xf32>
    tpu.vector_store %arg5[%c0_9, %c0_10], %8 {strides = array<i32>} : memref<16x16xf32, #tpu.memory_space<vmem>>, vector<16x16xf32>,
    return
  }
  func.func @transform_0(%arg0: i32) -> (i32, i32) {
    %c0_i32 = arith.constant 0 : i32
    %c0_i32_0 = arith.constant 0 : i32
    return %arg0, %c0_i32 : i32, i32
  }
  func.func @transform_1(%arg0: i32) -> (i32, i32) {
    %c0_i32 = arith.constant 0 : i32
    %c0_i32_0 = arith.constant 0 : i32
    %c0_i32_1 = arith.constant 0 : i32
    return %c0_i32, %c0_i32_0 : i32, i32
  }
  func.func @transform_2(%arg0: i32) -> (i32, i32) {
    %c0_i32 = arith.constant 0 : i32
    %c0_i32_0 = arith.constant 0 : i32
    %c0_i32_1 = arith.constant 0 : i32
    return %c0_i32, %c0_i32_0 : i32, i32
  }
  func.func @transform_3(%arg0: i32) -> (i32, i32) {
    %c0_i32 = arith.constant 0 : i32
    %c0_i32_0 = arith.constant 0 : i32
    %c0_i32_1 = arith.constant 0 : i32
    return %c0_i32, %c0_i32_0 : i32, i32
  }
  func.func @transform_4(%arg0: i32) -> (i32, i32) {
    %c0_i32 = arith.constant 0 : i32
    %c0_i32_0 = arith.constant 0 : i32
    return %arg0, %c0_i32 : i32, i32
  }
}

</mosaic_0001>

<bundles_post_ra>
// kernel: tpu_custom_call.1
= control target key start
LH: loop header
LB: loop body
LE: loop exit
PB: predicated region body
PF: predicated region fallthrough
CT: control target
= control target key end

     0   :  { %s506_s0 = inlined_call_operand.vmem [shape: f32[16,32], index: 0, kind: input, shape index: {}]   ;;  %s507_s1 = inlined_call_operand.vmem [shape: f32[32,64], index: 1, kind: input, shape index: {}]   ;;  %s508_s2 = inlined_call_operand.vmem [shape: f32[64,48], index: 2, kind: input, shape index: {}]   ;;  %s509_s3 = inlined_call_operand.vmem [shape: f32[48,16], index: 3, kind: input, shape index: {}]   ;;  %s510_s4 = inlined_call_operand.hbm [shape: f32[16,16], index: 4, kind: output, shape index: {}]  }
   0x1   :  { %v23_v0 = vld [vmem:[%s507_s1 + $0x18] sm:$0xff]  ;;  %v22_v1 = vld [vmem:[%s507_s1 + $0x10] sm:$0xff]  ;;  %v18_v2 = vld [vmem:[%s506_s0] sm:$0xff] }
   0x2   :  { %337 = vmatprep.subr.mxu0 %v23_v0  ;;  %v19_v3 = vld [vmem:[%s506_s0 + $0x8] sm:$0xff]  ;;  %385 = vtanh.f32 %v18_v2 }
   0x3   :  { %338 = vmatpush3.msra.mxu0 %v23_v0  ;;  %v21_v4 = vld [vmem:[%s507_s1 + $0x8] sm:$0xff] }
   0x4   :  { %9 = vsyncpa [#allocation3], 0  ;;  %339 = vmatprep.subr.mxu0 %v22_v1  ;;  %387 = vtanh.f32 %v19_v3  ;;  %v20_v5 = vld [vmem:[%s507_s1] sm:$0xff]  ;;  %vm26_vm0 = vcmask 261120   ;;  %v115_v8 = vld [vmem:[%s508_s2 + $0x38] sm:$0xff]  ;;  %vm118_vm1 = vcmask 523264  }
   0x5   :  { %340 = vmatpush3.msra.mxu0 %v22_v1  ;;  %348 = vmatprep.subr.mxu1 %v115_v8  ;;  %v114_v9 = vld [vmem:[%s508_s2 + $0x30] sm:$0xff]  ;;  %v113_v10 = vld [vmem:[%s508_s2 + $0x28] sm:$0xff]  ;;  %v112_v11 = vld [vmem:[%s508_s2 + $0x20] sm:$0xff]  ;;  %vm206_vm2 = vcmask 392192   ;;  %s415_s26 = smov [#allocation2]   ;;  %vm288_vm3 = vcmask 130048  }
   0x6   :  { %341 = vmatprep.subr.mxu0 %v21_v4  ;;  %349 = vmatpush3.msra.mxu1 %v115_v8  ;;  %v111_v12 = vld [vmem:[%s508_s2 + $0x18] sm:$0xff]  ;;  %v110_v13 = vld [vmem:[%s508_s2 + $0x10] sm:$0xff]  ;;  %v109_v14 = vld [vmem:[%s508_s2 + $0x8] sm:$0xff]  ;;  %s296_s0 = sshll.u32 %s415_s26, 4  ;;  %s297_s0 = int_to_ptr.vmem [resolvable:$true] %s296_s0 }
   0x7   :  { %342 = vmatpush3.msra.mxu0 %v21_v4  ;;  %350 = vmatprep.subr.mxu1 %v114_v9  ;;  %v108_v15 = vld [vmem:[%s508_s2] sm:$0xff]  ;;  %v205_v16 = vld [vmem:[%s509_s3 + $0x28] sm:$0xff]  ;;  %v203_v18 = vld [vmem:[%s509_s3 + $0x18] sm:$0xff]  ;;  %s393_s27 = scalar_lea.vmem %s297_s0, 256  ;;  %p398_p1 = scmp.lt.s32.totalorder %s297_s0, %s297_s0 }
   0x8   :  { %343 = vmatprep.subr.mxu0 %v20_v5  ;;  %351 = vmatpush3.msra.mxu1 %v114_v9  ;;  %v204_v17 = vld [vmem:[%s509_s3 + $0x20] sm:$0xff]  ;;  %v202_v19 = vld [vmem:[%s509_s3 + $0x10] sm:$0xff]  ;;  %v201_v24 = vld [vmem:[%s509_s3 + $0x8] sm:$0xff]  ;;  %p394_p0 = scmp.ne.s32.totalorder %s297_s0, %s393_s27  ;;  %p399_p2 = scmp.lt.s32.totalorder %s393_s27, %s393_s27 }
   0x9   :  { %344 = vmatpush3.msra.mxu0 %v20_v5  ;;  %352 = vmatprep.subr.mxu1 %v113_v10  ;;  %v200_v25 = vld [vmem:[%s509_s3] sm:$0xff] }
   0xa   :  { %353 = vmatpush3.msra.mxu1 %v113_v10  ;;  %367 = vmatprep.subr.mxu0 %v205_v16  ;;  %p400_p3 = por %p399_p2, %p398_p1 }
   0xb   :  { %354 = vmatprep.subr.mxu1 %v112_v11 }
   0xc   :  { %355 = vmatpush3.msra.mxu1 %v112_v11  ;;  %p401_p4 = pnand %p400_p3, %p394_p0 }
   0xd   :  { %356 = vmatprep.subr.mxu1 %v111_v12 }
   0xe   :  { %357 = vmatpush3.msra.mxu1 %v111_v12 }
   0xf   :  { %v386_v6 = vpop.eup %385  ;;  %358 = vmatprep.subr.mxu1 %v110_v13 }
  0x10   :  { %345 = vmatprep.mubr.msk.f32.mxu0 %vm26_vm0, %v386_v6  ;;  %359 = vmatpush3.msra.mxu1 %v110_v13 }
  0x11   :  { %v388_v7 = vpop.eup %387  ;;  %360 = vmatprep.subr.mxu1 %v109_v14 }
  0x12   :  { %346 = vmatmul.mubr.msk.f32.vlgmr.msra.gmra.mxu0 %vm26_vm0, %v388_v7  ;;  %361 = vmatpush3.msra.mxu1 %v109_v14 }
  0x13   :  { %362 = vmatprep.subr.mxu1 %v108_v15  ;;  %368 = vmatpush3.msra.mxu0 %v205_v16 }
  0x14   :  { %363 = vmatpush3.msra.mxu1 %v108_v15  ;;  %369 = vmatprep.subr.mxu0 %v204_v17 }
  0x15   :  { %370 = vmatpush3.msra.mxu0 %v204_v17 }
  0x16   :  { %371 = vmatprep.subr.mxu0 %v203_v18 }
  0x17   :  { %372 = vmatpush3.msra.mxu0 %v203_v18 }
  0x18   :  { %373 = vmatprep.subr.mxu0 %v202_v19 }
  0x19   :  { %374 = vmatpush3.msra.mxu0 %v202_v19 }
  0x1a   :  { %375 = vmatprep.subr.mxu0 %v201_v24 }
  0x1b   :  { %376 = vmatpush3.msra.mxu0 %v201_v24 }
  0x1c   :  { %377 = vmatprep.subr.mxu0 %v200_v25 }
  0x1d   :  { %378 = vmatpush3.msra.mxu0 %v200_v25 }
  0xd2   :  { %v347_v20 = vpop.f32.mrf.mxu0 }
  0xd4   :  { %v99_v21 = vpop.f32.mrf.mxu0 }
  0xd5   :  { %389 = vtanh.f32 %v99_v21 }
  0xd6   :  { %391 = vtanh.f32 %v347_v20 }
  0xe2   :  { %v390_v22 = vpop.eup %389 }
  0xe3   :  { %v392_v23 = vpop.eup %391  ;;  %364 = vmatprep.mubr.msk.f32.mxu1 %vm118_vm1, %v390_v22 }
  0xe4   :  { %365 = vmatmul.mubr.msk.f32.vlgmr.msra.gmra.mxu1 %vm118_vm1, %v392_v23 }
 0x1a4   :  { %v366_v26 = vpop.f32.mrf.mxu1 }
 0x1a6   :  { %v191_v27 = vpop.f32.mrf.mxu1 }
 0x1a7   :  { %379 = vmatprep.mubr.msk.f32.mxu0 %vm206_vm2, %v191_v27 }
 0x1a8   :  { %380 = vmatmul.mubr.msk.f32.vlgmr.msra.gmra.mxu0 %vm206_vm2, %v366_v26 }
 0x268   :  { %v381_v28 = vpop.f32.mrf.mxu0 }
 0x269   :  { %290 = vst.msk [vmem:[#allocation2 + $0x8] sm:$0xff] %vm288_vm3, %v381_v28 }
 0x26a   :  { %v279_v29 = vpop.f32.mrf.mxu0 }
 0x26b   :  { %289 = vst.msk [vmem:[#allocation2] sm:$0xff] %vm288_vm3, %v279_v29 }
 0x26c   :  { %404 = shalt.err (!%p401_p4)
}
 0x26d   :  { %s416_s3 = smov 128   ;;  %s417_s28 = smov 8  }
 0x26e   :  { %302 = dma.vmem_to_hbm [thread:$0]  %s297_s0, 256, %s510_s4, [#allocation3], %s416_s3, %s416_s3, %s417_s28  }
 0x26f   :  { %413 = dma.done.wait [#allocation3], 256  }
 0x270   :  { %414 = vsyncadd [#allocation3], 4294967040 }
 0x271   :  { %306 = vsyncpa [#allocation3], 1 }

</bundles_post_ra>
